<compile_context>
chip_gen: v6e
topology: v6e:2x2x1
jax: 0.10.0
libtpu: 0.0.40
codegen_flags: <defaults>
</compile_context>

<pallas_src>
import jax
import jax.numpy as jnp
import numpy as np
from jax.experimental import pallas as pl
from jax.experimental.pallas import tpu as pltpu

# ----- small, module-consistent hyperparameters -----
B = 2            # batch
N = 4            # graph nodes
SRC_LEN = 4      # tokens per node
HID_C = 32       # embedding dim
IN_DIM = 16      # embedding vocab size == output classes
N_LAYERS = 2     # SAGE layers
F = SRC_LEN * HID_C      # 128 = SAGE feature width (in_c == hid_c == F)
NB = N * B
OH = SRC_LEN * IN_DIM    # 64 = one-hot width
LOGIT_PAD = 128          # lane-dense output width (>= IN_DIM)
NEG = -1e30


def predict_kernel(idx_ref, amask_ref, wemb_ref,
                   wpool_ref, bpool_ref, wsn_ref, bsage_ref,
                   wres_ref, bres_ref, wlin_ref, blin_ref, out_ref):
    # ---- OneHotProcess: embedding lookup as one-hot @ block-diag embedding ----
    # idx_ref is position-expanded in the wrapper: idx_exp[r, c] = idx[r, c // IN_DIM]
    # (out-of-range tokens yield an all-zero one-hot row => zero embedding)
    voc = jax.lax.broadcasted_iota(jnp.int32, (NB, OH), 1) % IN_DIM      # vocab id per column
    onehot = (voc == idx_ref[...]).astype(jnp.bfloat16)                  # (NB, OH)
    x = jnp.dot(onehot, wemb_ref[...],
                preferred_element_type=jnp.float32)                      # (NB, F) f32

    amask = amask_ref[...]                                               # (N, NB, F) f32: 0 / -1e30

    # ---- SAGEModel: n_layers of SAGEConv('pool') + residual ----
    for i in range(N_LAYERS):
        # fc_pool + relu on source features (bf16 matmul, f32 accumulate / relu)
        m = jnp.maximum(
            jnp.dot(x.astype(jnp.bfloat16), wpool_ref[i],
                    preferred_element_type=jnp.float32) + bpool_ref[i],
            0.0)                                                         # (NB, F) f32

        # max-pool aggregation over in-neighbors: additive lane-dense mask,
        # activation stays in (NB, F) row layout (reshape only on a broadcast).
        neigh = jnp.full((NB, F), NEG, jnp.float32)
        for s in range(N):
            src = m[s * B:(s + 1) * B, :]                                # (B, F) rows of source s
            cand = jnp.broadcast_to(src[None, :, :], (N, B, F)).reshape(NB, F)
            neigh = jnp.maximum(neigh, cand + amask[s])
        # zero in-degree sentinel -> 0 (valid because m >= 0 post-ReLU)
        neigh = jnp.maximum(neigh, 0.0)

        # fused rst = fc_self(x) + fc_neigh(neigh) + bias  (one K=2F matmul)
        xn = jnp.concatenate([x, neigh], axis=1).astype(jnp.bfloat16)    # (NB, 2F)
        rst = jnp.dot(xn, wsn_ref[i],
                      preferred_element_type=jnp.float32) + bsage_ref[i]

        # residual: Linear for layer 0, identity otherwise
        if i == 0:
            res = jnp.dot(x.astype(jnp.bfloat16), wres_ref[...],
                          preferred_element_type=jnp.float32) + bres_ref[...]
        else:
            res = x
        x = jnp.maximum(rst, 0.0) + res

    # ---- final Linear (lane-dense, padded to 128 cols) + softmax ----
    logits = jnp.dot(x.astype(jnp.bfloat16), wlin_ref[...],
                     preferred_element_type=jnp.float32) + blin_ref[...]  # (NB, 128)
    lmax = jnp.max(logits, axis=-1, keepdims=True)
    e = jnp.exp(logits - lmax)                 # padded cols: exp(-1e30 - lmax) == 0
    denom = jnp.sum(e, axis=-1, keepdims=True)
    out_ref[...] = e / denom                   # exact normalization (rows sum to 1)


def init_params(key):
    ks = jax.random.split(key, 10)
    s = 0.1
    return {
        "embed":  jax.random.normal(ks[0], (IN_DIM, HID_C), jnp.float32) * s,
        "wpool":  jax.random.normal(ks[1], (N_LAYERS, F, F), jnp.float32) * s,
        "bpool":  jax.random.normal(ks[2], (N_LAYERS, 1, F), jnp.float32) * s,
        "wself":  jax.random.normal(ks[3], (N_LAYERS, F, F), jnp.float32) * s,
        "wneigh": jax.random.normal(ks[4], (N_LAYERS, F, F), jnp.float32) * s,
        "bsage":  jax.random.normal(ks[5], (N_LAYERS, 1, F), jnp.float32) * s,
        "wres":   jax.random.normal(ks[6], (F, F), jnp.float32) * s,
        "bres":   jax.random.normal(ks[7], (1, F), jnp.float32) * s,
        "wlin":   jax.random.normal(ks[8], (F, IN_DIM), jnp.float32) * s,
        "blin":   jax.random.normal(ks[9], (1, IN_DIM), jnp.float32) * s,
    }


def block_diag_embed(embed):
    # (SRC_LEN*IN_DIM, SRC_LEN*HID_C) block-diagonal matrix: onehot @ this == concat of lookups
    w = np.zeros((OH, F), np.float32)
    e = np.asarray(embed)
    for s in range(SRC_LEN):
        w[s * IN_DIM:(s + 1) * IN_DIM, s * HID_C:(s + 1) * HID_C] = e
    return jnp.asarray(w)


def make_kernel_params(params):
    """Fuse / pad / quantize weights for the kernel (done once, outside jit path)."""
    wlin_pad = jnp.concatenate(
        [params["wlin"], jnp.zeros((F, LOGIT_PAD - IN_DIM), jnp.float32)], axis=1)
    blin_pad = jnp.concatenate(
        [params["blin"], jnp.full((1, LOGIT_PAD - IN_DIM), NEG, jnp.float32)], axis=1)
    return {
        "wemb":  block_diag_embed(params["embed"]).astype(jnp.bfloat16),           # (OH, F)
        "wpool": params["wpool"].astype(jnp.bfloat16),                             # (L, F, F)
        "bpool": params["bpool"],                                                  # (L, 1, F) f32
        "wsn":   jnp.concatenate([params["wself"], params["wneigh"]],
                                 axis=1).astype(jnp.bfloat16),                     # (L, 2F, F)
        "bsage": params["bsage"],                                                  # (L, 1, F) f32
        "wres":  params["wres"].astype(jnp.bfloat16),                              # (F, F)
        "bres":  params["bres"],                                                   # (1, F) f32
        "wlin":  wlin_pad.astype(jnp.bfloat16),                                    # (F, 128)
        "blin":  blin_pad,                                                         # (1, 128) f32
    }


def make_additive_mask(adj):
    """Lane-dense additive mask: amask[s, d*B+b, :] = 0 if edge s->d else -1e30."""
    edge_sd = np.asarray(adj).T                                        # (src, dst)
    amask_sd = np.where(edge_sd > 0.5, 0.0, NEG).astype(np.float32)    # (N, N)
    amask = np.repeat(amask_sd[:, :, None], B, axis=2).reshape(N, NB, 1)
    amask = np.broadcast_to(amask, (N, NB, F)).astype(np.float32)
    return jnp.asarray(np.ascontiguousarray(amask))                    # (N, NB, F), ~16 KB


# advisory cost hint for XLA scheduling around the tiny custom call
_FLOPS = 2 * NB * (OH * F + N_LAYERS * (F * F + 2 * F * F) + F * F + F * LOGIT_PAD)
_BYTES = (NB * OH * 4 + N * NB * F * 4                      # idx_exp + amask
          + OH * F * 2 + N_LAYERS * (F * F * 2 + 2 * F * F * 2 + 2 * F * 4)
          + F * F * 2 + F * 4 + F * LOGIT_PAD * 2 + LOGIT_PAD * 4
          + NB * LOGIT_PAD * 4)
_TRANS = NB * LOGIT_PAD


@jax.jit
def predict_model(input_data, amask, kparams):
    # input_data: (B, N, SRC_LEN) int32 raw tokens
    idx = input_data // 20 - 1                                     # index preprocessing (glue)
    idx = jnp.transpose(idx, (1, 0, 2)).reshape(NB, SRC_LEN).astype(jnp.int32)
    idx_exp = jnp.repeat(idx, IN_DIM, axis=1)                      # (NB, OH): idx[r, c // IN_DIM]

    out = pl.pallas_call(
        predict_kernel,
        out_shape=jax.ShapeDtypeStruct((NB, LOGIT_PAD), jnp.float32),
        in_specs=[pl.BlockSpec(memory_space=pltpu.MemorySpace.VMEM) for _ in range(11)],
        out_specs=pl.BlockSpec(memory_space=pltpu.MemorySpace.VMEM),
        cost_estimate=pl.CostEstimate(flops=_FLOPS, transcendentals=_TRANS,
                                      bytes_accessed=_BYTES),
    )(idx_exp, amask,
      kparams["wemb"], kparams["wpool"], kparams["bpool"],
      kparams["wsn"], kparams["bsage"], kparams["wres"], kparams["bres"],
      kparams["wlin"], kparams["blin"])

    probs = out[:, :IN_DIM]                                        # drop lane padding
    # rows are (node, batch) -> (N, B, IN_DIM) -> permute back to (B, N, IN_DIM)
    return jnp.transpose(probs.reshape(N, B, IN_DIM), (1, 0, 2))


def reference(input_data, adj, params):
    # pure-JAX reference (same math; weights rounded through bf16 like the kernel)
    q = lambda w: w.astype(jnp.bfloat16).astype(jnp.float32)
    idx = input_data // 20 - 1                                     # (B, N, S)
    feat = q(params["embed"])[idx]                                 # (B, N, S, H)
    x = jnp.transpose(feat.reshape(B, N, F), (1, 0, 2))            # (N, B, F)
    deg = adj.sum(axis=1)                                          # (N,)
    for i in range(N_LAYERS):
        m = jax.nn.relu(x @ q(params["wpool"][i]) + params["bpool"][i][0])
        masked = jnp.where(adj[:, :, None, None] > 0.5, m[None, :, :, :], NEG)
        neigh = masked.max(axis=1)                                 # (N, B, F)
        neigh = jnp.where(deg[:, None, None] > 0.5, neigh, 0.0)
        rst = x @ q(params["wself"][i]) + neigh @ q(params["wneigh"][i]) + params["bsage"][i][0]
        res = (x @ q(params["wres"]) + params["bres"][0]) if i == 0 else x
        x = jax.nn.relu(rst) + res
    logits = x @ q(params["wlin"]) + params["blin"][0]
    return jnp.transpose(jax.nn.softmax(logits, axis=-1), (1, 0, 2))


if __name__ == "__main__":
    key = jax.random.PRNGKey(0)
    kp, kd = jax.random.split(key)
    params = init_params(kp)
    kparams = make_kernel_params(params)

    # deterministic small graph (src_id -> dst_id); every node has >=1 in-edge
    src_id = np.array([0, 1, 2, 3, 0, 2], np.int32)
    dst_id = np.array([1, 2, 3, 0, 2, 0], np.int32)
    adj = np.zeros((N, N), np.float32)                 # adj[dst, src]
    adj[dst_id, src_id] = 1.0

    amask = make_additive_mask(adj)                    # (N, NB, F) lane-dense additive mask
    adj_j = jnp.asarray(adj)

    # integer input tokens so that token // 20 - 1 lands in [0, IN_DIM)
    input_data = jax.random.randint(kd, (B, N, SRC_LEN), 20, 20 * (IN_DIM + 1),
                                    dtype=jnp.int32)

    out = predict_model(input_data, amask, kparams)
    out = jax.block_until_ready(out)

    ref = reference(input_data, adj_j, params)
    assert out.shape == (B, N, IN_DIM)
    np.testing.assert_allclose(np.asarray(out), np.asarray(ref), atol=2e-3, rtol=2e-3)
    # rows of softmax must sum to ~1 (exact f32 normalization now)
    np.testing.assert_allclose(np.asarray(out).sum(-1), np.ones((B, N)), atol=1e-3)

    print("KERNEL_OK")
</pallas_src>

<mosaic_0001>
module attributes {stable_mosaic.version = 11 : i64} {
  func.func @predict_kernel(%arg0: memref<8x64xi32, #tpu.memory_space<vmem>>, %arg1: memref<4x8x128xf32, #tpu.memory_space<vmem>>, %arg2: memref<64x128xbf16, #tpu.memory_space<vmem>>, %arg3: memref<2x128x128xbf16, #tpu.memory_space<vmem>>, %arg4: memref<2x1x128xf32, #tpu.memory_space<vmem>>, %arg5: memref<2x256x128xbf16, #tpu.memory_space<vmem>>, %arg6: memref<2x1x128xf32, #tpu.memory_space<vmem>>, %arg7: memref<128x128xbf16, #tpu.memory_space<vmem>>, %arg8: memref<1x128xf32, #tpu.memory_space<vmem>>, %arg9: memref<128x128xbf16, #tpu.memory_space<vmem>>, %arg10: memref<1x128xf32, #tpu.memory_space<vmem>>, %arg11: memref<8x128xf32, #tpu.memory_space<vmem>>) attributes {dimension_semantics = [], scalar_prefetch = 0 : i64, scratch_operands = 0 : i64, tpu.core_type = #tpu.core_type<tc>} {
    %0 = tpu.iota {dimensions = array<i32: 1>} : vector<8x64xi32>
    %c16_i32 = arith.constant 16 : i32
    %c0_i32 = arith.constant 0 : i32
    %1 = arith.cmpi eq, %c16_i32, %c0_i32 : i32
    %c1_i32 = arith.constant 1 : i32
    %2 = arith.select %1, %c1_i32, %c16_i32 : i32
    %3 = vector.broadcast %2 : i32 to vector<8x64xi32>
    %4 = arith.remsi %0, %3 : vector<8x64xi32>
    %c0_i32_0 = arith.constant 0 : i32
    %5 = vector.broadcast %c0_i32_0 : i32 to vector<8x64xi32>
    %6 = arith.cmpi ne, %4, %5 : vector<8x64xi32>
    %c0_i32_1 = arith.constant 0 : i32
    %7 = vector.broadcast %c0_i32_1 : i32 to vector<8x64xi32>
    %8 = arith.cmpi slt, %4, %7 : vector<8x64xi32>
    %c0_i32_2 = arith.constant 0 : i32
    %9 = arith.cmpi slt, %2, %c0_i32_2 : i32
    %10 = vector.broadcast %9 : i1 to vector<8x64xi1>
    %11 = vector.broadcast %10 : vector<8x64xi1> to vector<8x64xi1>
    %12 = arith.xori %8, %11 : vector<8x64xi1>
    %13 = arith.andi %12, %6 : vector<8x64xi1>
    %14 = vector.broadcast %2 : i32 to vector<8x64xi32>
    %15 = arith.addi %4, %14 : vector<8x64xi32>
    %16 = arith.select %13, %15, %4 : vector<8x64xi1>, vector<8x64xi32>
    %c0 = arith.constant 0 : index
    %c0_3 = arith.constant 0 : index
    %17 = vector.load %arg0[%c0, %c0_3] : memref<8x64xi32, #tpu.memory_space<vmem>>, vector<8x64xi32>
    %18 = arith.cmpi eq, %16, %17 : vector<8x64xi32>
    %19 = arith.extui %18 : vector<8x64xi1> to vector<8x64xi32>
    %20 = arith.sitofp %19 : vector<8x64xi32> to vector<8x64xf32>
    %21 = arith.truncf %20 : vector<8x64xf32> to vector<8x64xbf16>
    %c0_4 = arith.constant 0 : index
    %c0_5 = arith.constant 0 : index
    %22 = vector.load %arg2[%c0_4, %c0_5] : memref<64x128xbf16, #tpu.memory_space<vmem>>, vector<64x128xbf16>
    %cst = arith.constant dense<0.000000e+00> : vector<8x128xf32>
    %23 = tpu.matmul %21, %22, %cst {dimension_numbers = #tpu.dot_dimension_numbers<[1], [0], [0], [1], [0, 0, 1, 1], [], []>} : vector<8x64xbf16>, vector<64x128xbf16>, vector<8x128xf32> -> vector<8x128xf32>
    %c0_6 = arith.constant 0 : index
    %c0_7 = arith.constant 0 : index
    %c0_8 = arith.constant 0 : index
    %24 = vector.load %arg1[%c0_6, %c0_7, %c0_8] : memref<4x8x128xf32, #tpu.memory_space<vmem>>, vector<4x8x128xf32>
    %25 = arith.truncf %23 : vector<8x128xf32> to vector<8x128xbf16>
    %c0_9 = arith.constant 0 : index
    %c0_10 = arith.constant 0 : index
    %c0_11 = arith.constant 0 : index
    %26 = vector.load %arg3[%c0_9, %c0_10, %c0_11] : memref<2x128x128xbf16, #tpu.memory_space<vmem>>, vector<1x128x128xbf16>
    %27 = vector.shape_cast %26 : vector<1x128x128xbf16> to vector<128x128xbf16>
    %cst_12 = arith.constant dense<0.000000e+00> : vector<8x128xf32>
    %28 = tpu.matmul %25, %27, %cst_12 {dimension_numbers = #tpu.dot_dimension_numbers<[1], [0], [0], [1], [0, 0, 1, 1], [], []>} : vector<8x128xbf16>, vector<128x128xbf16>, vector<8x128xf32> -> vector<8x128xf32>
    %c0_13 = arith.constant 0 : index
    %c0_14 = arith.constant 0 : index
    %c0_15 = arith.constant 0 : index
    %29 = vector.load %arg4[%c0_13, %c0_14, %c0_15] : memref<2x1x128xf32, #tpu.memory_space<vmem>>, vector<1x1x128xf32>
    %30 = vector.shape_cast %29 : vector<1x1x128xf32> to vector<1x128xf32>
    %31 = vector.broadcast %30 : vector<1x128xf32> to vector<8x128xf32>
    %32 = arith.addf %28, %31 : vector<8x128xf32>
    %cst_16 = arith.constant 0.000000e+00 : f32
    %33 = vector.broadcast %cst_16 : f32 to vector<8x128xf32>
    %34 = arith.maximumf %32, %33 : vector<8x128xf32>
    %cst_17 = arith.constant -1.000000e+30 : f32
    %35 = vector.broadcast %cst_17 : f32 to vector<8x128xf32>
    %36 = vector.extract_strided_slice %34 {offsets = [0, 0], sizes = [2, 128], strides = [1, 1]} : vector<8x128xf32> to vector<2x128xf32>
    %37 = vector.shape_cast %36 : vector<2x128xf32> to vector<1x2x128xf32>
    %38 = vector.shape_cast %37 : vector<1x2x128xf32> to vector<1x2x128xf32>
    %39 = vector.broadcast %38 : vector<1x2x128xf32> to vector<4x2x128xf32>
    %40 = vector.shape_cast %39 : vector<4x2x128xf32> to vector<8x128xf32>
    %41 = vector.extract_strided_slice %24 {offsets = [0, 0, 0], sizes = [1, 8, 128], strides = [1, 1, 1]} : vector<4x8x128xf32> to vector<1x8x128xf32>
    %42 = vector.shape_cast %41 : vector<1x8x128xf32> to vector<8x128xf32>
    %43 = arith.addf %40, %42 : vector<8x128xf32>
    %44 = arith.maximumf %35, %43 : vector<8x128xf32>
    %45 = vector.extract_strided_slice %34 {offsets = [2, 0], sizes = [2, 128], strides = [1, 1]} : vector<8x128xf32> to vector<2x128xf32>
    %46 = vector.shape_cast %45 : vector<2x128xf32> to vector<1x2x128xf32>
    %47 = vector.shape_cast %46 : vector<1x2x128xf32> to vector<1x2x128xf32>
    %48 = vector.broadcast %47 : vector<1x2x128xf32> to vector<4x2x128xf32>
    %49 = vector.shape_cast %48 : vector<4x2x128xf32> to vector<8x128xf32>
    %50 = vector.extract_strided_slice %24 {offsets = [1, 0, 0], sizes = [1, 8, 128], strides = [1, 1, 1]} : vector<4x8x128xf32> to vector<1x8x128xf32>
    %51 = vector.shape_cast %50 : vector<1x8x128xf32> to vector<8x128xf32>
    %52 = arith.addf %49, %51 : vector<8x128xf32>
    %53 = arith.maximumf %44, %52 : vector<8x128xf32>
    %54 = vector.extract_strided_slice %34 {offsets = [4, 0], sizes = [2, 128], strides = [1, 1]} : vector<8x128xf32> to vector<2x128xf32>
    %55 = vector.shape_cast %54 : vector<2x128xf32> to vector<1x2x128xf32>
    %56 = vector.shape_cast %55 : vector<1x2x128xf32> to vector<1x2x128xf32>
    %57 = vector.broadcast %56 : vector<1x2x128xf32> to vector<4x2x128xf32>
    %58 = vector.shape_cast %57 : vector<4x2x128xf32> to vector<8x128xf32>
    %59 = vector.extract_strided_slice %24 {offsets = [2, 0, 0], sizes = [1, 8, 128], strides = [1, 1, 1]} : vector<4x8x128xf32> to vector<1x8x128xf32>
    %60 = vector.shape_cast %59 : vector<1x8x128xf32> to vector<8x128xf32>
    %61 = arith.addf %58, %60 : vector<8x128xf32>
    %62 = arith.maximumf %53, %61 : vector<8x128xf32>
    %63 = vector.extract_strided_slice %34 {offsets = [6, 0], sizes = [2, 128], strides = [1, 1]} : vector<8x128xf32> to vector<2x128xf32>
    %64 = vector.shape_cast %63 : vector<2x128xf32> to vector<1x2x128xf32>
    %65 = vector.shape_cast %64 : vector<1x2x128xf32> to vector<1x2x128xf32>
    %66 = vector.broadcast %65 : vector<1x2x128xf32> to vector<4x2x128xf32>
    %67 = vector.shape_cast %66 : vector<4x2x128xf32> to vector<8x128xf32>
    %68 = vector.extract_strided_slice %24 {offsets = [3, 0, 0], sizes = [1, 8, 128], strides = [1, 1, 1]} : vector<4x8x128xf32> to vector<1x8x128xf32>
    %69 = vector.shape_cast %68 : vector<1x8x128xf32> to vector<8x128xf32>
    %70 = arith.addf %67, %69 : vector<8x128xf32>
    %71 = arith.maximumf %62, %70 : vector<8x128xf32>
    %cst_18 = arith.constant 0.000000e+00 : f32
    %72 = vector.broadcast %cst_18 : f32 to vector<8x128xf32>
    %73 = arith.maximumf %71, %72 : vector<8x128xf32>
    %74 = tpu.concatenate %23, %73 in 1 : vector<8x128xf32>, vector<8x128xf32> -> vector<8x256xf32>
    %75 = arith.truncf %74 : vector<8x256xf32> to vector<8x256xbf16>
    %c0_19 = arith.constant 0 : index
    %c0_20 = arith.constant 0 : index
    %c0_21 = arith.constant 0 : index
    %76 = vector.load %arg5[%c0_19, %c0_20, %c0_21] : memref<2x256x128xbf16, #tpu.memory_space<vmem>>, vector<1x256x128xbf16>
    %77 = vector.shape_cast %76 : vector<1x256x128xbf16> to vector<256x128xbf16>
    %cst_22 = arith.constant dense<0.000000e+00> : vector<8x128xf32>
    %78 = tpu.matmul %75, %77, %cst_22 {dimension_numbers = #tpu.dot_dimension_numbers<[1], [0], [0], [1], [0, 0, 1, 1], [], []>} : vector<8x256xbf16>, vector<256x128xbf16>, vector<8x128xf32> -> vector<8x128xf32>
    %c0_23 = arith.constant 0 : index
    %c0_24 = arith.constant 0 : index
    %c0_25 = arith.constant 0 : index
    %79 = vector.load %arg6[%c0_23, %c0_24, %c0_25] : memref<2x1x128xf32, #tpu.memory_space<vmem>>, vector<1x1x128xf32>
    %80 = vector.shape_cast %79 : vector<1x1x128xf32> to vector<1x128xf32>
    %81 = vector.broadcast %80 : vector<1x128xf32> to vector<8x128xf32>
    %82 = arith.addf %78, %81 : vector<8x128xf32>
    %83 = arith.truncf %23 : vector<8x128xf32> to vector<8x128xbf16>
    %c0_26 = arith.constant 0 : index
    %c0_27 = arith.constant 0 : index
    %84 = vector.load %arg7[%c0_26, %c0_27] : memref<128x128xbf16, #tpu.memory_space<vmem>>, vector<128x128xbf16>
    %cst_28 = arith.constant dense<0.000000e+00> : vector<8x128xf32>
    %85 = tpu.matmul %83, %84, %cst_28 {dimension_numbers = #tpu.dot_dimension_numbers<[1], [0], [0], [1], [0, 0, 1, 1], [], []>} : vector<8x128xbf16>, vector<128x128xbf16>, vector<8x128xf32> -> vector<8x128xf32>
    %c0_29 = arith.constant 0 : index
    %c0_30 = arith.constant 0 : index
    %86 = vector.load %arg8[%c0_29, %c0_30] : memref<1x128xf32, #tpu.memory_space<vmem>>, vector<1x128xf32>
    %87 = vector.broadcast %86 : vector<1x128xf32> to vector<8x128xf32>
    %88 = arith.addf %85, %87 : vector<8x128xf32>
    %cst_31 = arith.constant 0.000000e+00 : f32
    %89 = vector.broadcast %cst_31 : f32 to vector<8x128xf32>
    %90 = arith.maximumf %82, %89 : vector<8x128xf32>
    %91 = arith.addf %90, %88 : vector<8x128xf32>
    %92 = arith.truncf %91 : vector<8x128xf32> to vector<8x128xbf16>
    %c1 = arith.constant 1 : index
    %c0_32 = arith.constant 0 : index
    %c0_33 = arith.constant 0 : index
    %93 = vector.load %arg3[%c1, %c0_32, %c0_33] : memref<2x128x128xbf16, #tpu.memory_space<vmem>>, vector<1x128x128xbf16>
    %94 = vector.shape_cast %93 : vector<1x128x128xbf16> to vector<128x128xbf16>
    %cst_34 = arith.constant dense<0.000000e+00> : vector<8x128xf32>
    %95 = tpu.matmul %92, %94, %cst_34 {dimension_numbers = #tpu.dot_dimension_numbers<[1], [0], [0], [1], [0, 0, 1, 1], [], []>} : vector<8x128xbf16>, vector<128x128xbf16>, vector<8x128xf32> -> vector<8x128xf32>
    %c1_35 = arith.constant 1 : index
    %c0_36 = arith.constant 0 : index
    %c0_37 = arith.constant 0 : index
    %96 = vector.load %arg4[%c1_35, %c0_36, %c0_37] : memref<2x1x128xf32, #tpu.memory_space<vmem>>, vector<1x1x128xf32>
    %97 = vector.shape_cast %96 : vector<1x1x128xf32> to vector<1x128xf32>
    %98 = vector.broadcast %97 : vector<1x128xf32> to vector<8x128xf32>
    %99 = arith.addf %95, %98 : vector<8x128xf32>
    %cst_38 = arith.constant 0.000000e+00 : f32
    %100 = vector.broadcast %cst_38 : f32 to vector<8x128xf32>
    %101 = arith.maximumf %99, %100 : vector<8x128xf32>
    %cst_39 = arith.constant -1.000000e+30 : f32
    %102 = vector.broadcast %cst_39 : f32 to vector<8x128xf32>
    %103 = vector.extract_strided_slice %101 {offsets = [0, 0], sizes = [2, 128], strides = [1, 1]} : vector<8x128xf32> to vector<2x128xf32>
    %104 = vector.shape_cast %103 : vector<2x128xf32> to vector<1x2x128xf32>
    %105 = vector.shape_cast %104 : vector<1x2x128xf32> to vector<1x2x128xf32>
    %106 = vector.broadcast %105 : vector<1x2x128xf32> to vector<4x2x128xf32>
    %107 = vector.shape_cast %106 : vector<4x2x128xf32> to vector<8x128xf32>
    %108 = vector.extract_strided_slice %24 {offsets = [0, 0, 0], sizes = [1, 8, 128], strides = [1, 1, 1]} : vector<4x8x128xf32> to vector<1x8x128xf32>
    %109 = vector.shape_cast %108 : vector<1x8x128xf32> to vector<8x128xf32>
    %110 = arith.addf %107, %109 : vector<8x128xf32>
    %111 = arith.maximumf %102, %110 : vector<8x128xf32>
    %112 = vector.extract_strided_slice %101 {offsets = [2, 0], sizes = [2, 128], strides = [1, 1]} : vector<8x128xf32> to vector<2x128xf32>
    %113 = vector.shape_cast %112 : vector<2x128xf32> to vector<1x2x128xf32>
    %114 = vector.shape_cast %113 : vector<1x2x128xf32> to vector<1x2x128xf32>
    %115 = vector.broadcast %114 : vector<1x2x128xf32> to vector<4x2x128xf32>
    %116 = vector.shape_cast %115 : vector<4x2x128xf32> to vector<8x128xf32>
    %117 = vector.extract_strided_slice %24 {offsets = [1, 0, 0], sizes = [1, 8, 128], strides = [1, 1, 1]} : vector<4x8x128xf32> to vector<1x8x128xf32>
    %118 = vector.shape_cast %117 : vector<1x8x128xf32> to vector<8x128xf32>
    %119 = arith.addf %116, %118 : vector<8x128xf32>
    %120 = arith.maximumf %111, %119 : vector<8x128xf32>
    %121 = vector.extract_strided_slice %101 {offsets = [4, 0], sizes = [2, 128], strides = [1, 1]} : vector<8x128xf32> to vector<2x128xf32>
    %122 = vector.shape_cast %121 : vector<2x128xf32> to vector<1x2x128xf32>
    %123 = vector.shape_cast %122 : vector<1x2x128xf32> to vector<1x2x128xf32>
    %124 = vector.broadcast %123 : vector<1x2x128xf32> to vector<4x2x128xf32>
    %125 = vector.shape_cast %124 : vector<4x2x128xf32> to vector<8x128xf32>
    %126 = vector.extract_strided_slice %24 {offsets = [2, 0, 0], sizes = [1, 8, 128], strides = [1, 1, 1]} : vector<4x8x128xf32> to vector<1x8x128xf32>
    %127 = vector.shape_cast %126 : vector<1x8x128xf32> to vector<8x128xf32>
    %128 = arith.addf %125, %127 : vector<8x128xf32>
    %129 = arith.maximumf %120, %128 : vector<8x128xf32>
    %130 = vector.extract_strided_slice %101 {offsets = [6, 0], sizes = [2, 128], strides = [1, 1]} : vector<8x128xf32> to vector<2x128xf32>
    %131 = vector.shape_cast %130 : vector<2x128xf32> to vector<1x2x128xf32>
    %132 = vector.shape_cast %131 : vector<1x2x128xf32> to vector<1x2x128xf32>
    %133 = vector.broadcast %132 : vector<1x2x128xf32> to vector<4x2x128xf32>
    %134 = vector.shape_cast %133 : vector<4x2x128xf32> to vector<8x128xf32>
    %135 = vector.extract_strided_slice %24 {offsets = [3, 0, 0], sizes = [1, 8, 128], strides = [1, 1, 1]} : vector<4x8x128xf32> to vector<1x8x128xf32>
    %136 = vector.shape_cast %135 : vector<1x8x128xf32> to vector<8x128xf32>
    %137 = arith.addf %134, %136 : vector<8x128xf32>
    %138 = arith.maximumf %129, %137 : vector<8x128xf32>
    %cst_40 = arith.constant 0.000000e+00 : f32
    %139 = vector.broadcast %cst_40 : f32 to vector<8x128xf32>
    %140 = arith.maximumf %138, %139 : vector<8x128xf32>
    %141 = tpu.concatenate %91, %140 in 1 : vector<8x128xf32>, vector<8x128xf32> -> vector<8x256xf32>
    %142 = arith.truncf %141 : vector<8x256xf32> to vector<8x256xbf16>
    %c1_41 = arith.constant 1 : index
    %c0_42 = arith.constant 0 : index
    %c0_43 = arith.constant 0 : index
    %143 = vector.load %arg5[%c1_41, %c0_42, %c0_43] : memref<2x256x128xbf16, #tpu.memory_space<vmem>>, vector<1x256x128xbf16>
    %144 = vector.shape_cast %143 : vector<1x256x128xbf16> to vector<256x128xbf16>
    %cst_44 = arith.constant dense<0.000000e+00> : vector<8x128xf32>
    %145 = tpu.matmul %142, %144, %cst_44 {dimension_numbers = #tpu.dot_dimension_numbers<[1], [0], [0], [1], [0, 0, 1, 1], [], []>} : vector<8x256xbf16>, vector<256x128xbf16>, vector<8x128xf32> -> vector<8x128xf32>
    %c1_45 = arith.constant 1 : index
    %c0_46 = arith.constant 0 : index
    %c0_47 = arith.constant 0 : index
    %146 = vector.load %arg6[%c1_45, %c0_46, %c0_47] : memref<2x1x128xf32, #tpu.memory_space<vmem>>, vector<1x1x128xf32>
    %147 = vector.shape_cast %146 : vector<1x1x128xf32> to vector<1x128xf32>
    %148 = vector.broadcast %147 : vector<1x128xf32> to vector<8x128xf32>
    %149 = arith.addf %145, %148 : vector<8x128xf32>
    %cst_48 = arith.constant 0.000000e+00 : f32
    %150 = vector.broadcast %cst_48 : f32 to vector<8x128xf32>
    %151 = arith.maximumf %149, %150 : vector<8x128xf32>
    %152 = arith.addf %151, %91 : vector<8x128xf32>
    %153 = arith.truncf %152 : vector<8x128xf32> to vector<8x128xbf16>
    %c0_49 = arith.constant 0 : index
    %c0_50 = arith.constant 0 : index
    %154 = vector.load %arg9[%c0_49, %c0_50] : memref<128x128xbf16, #tpu.memory_space<vmem>>, vector<128x128xbf16>
    %cst_51 = arith.constant dense<0.000000e+00> : vector<8x128xf32>
    %155 = tpu.matmul %153, %154, %cst_51 {dimension_numbers = #tpu.dot_dimension_numbers<[1], [0], [0], [1], [0, 0, 1, 1], [], []>} : vector<8x128xbf16>, vector<128x128xbf16>, vector<8x128xf32> -> vector<8x128xf32>
    %c0_52 = arith.constant 0 : index
    %c0_53 = arith.constant 0 : index
    %156 = vector.load %arg10[%c0_52, %c0_53] : memref<1x128xf32, #tpu.memory_space<vmem>>, vector<1x128xf32>
    %157 = vector.broadcast %156 : vector<1x128xf32> to vector<8x128xf32>
    %158 = arith.addf %155, %157 : vector<8x128xf32>
    %cst_54 = arith.constant dense<0xFF800000> : vector<8xf32>
    %159 = vector.multi_reduction <maximumf>, %158, %cst_54 [1] : vector<8x128xf32> to vector<8xf32>
    %160 = vector.shape_cast %159 : vector<8xf32> to vector<8x1xf32>
    %161 = vector.broadcast %160 : vector<8x1xf32> to vector<8x128xf32>
    %162 = arith.subf %158, %161 : vector<8x128xf32>
    %163 = math.exp %162 : vector<8x128xf32>
    %cst_55 = arith.constant dense<0.000000e+00> : vector<8xf32>
    %164 = vector.multi_reduction <add>, %163, %cst_55 [1] : vector<8x128xf32> to vector<8xf32>
    %165 = vector.shape_cast %164 : vector<8xf32> to vector<8x1xf32>
    %166 = vector.broadcast %165 : vector<8x1xf32> to vector<8x128xf32>
    %167 = arith.divf %163, %166 : vector<8x128xf32>
    %c0_56 = arith.constant 0 : index
    %c0_57 = arith.constant 0 : index
    %168 = vector.load %arg11[%c0_56, %c0_57] : memref<8x128xf32, #tpu.memory_space<vmem>>, vector<8x128xf32>
    tpu.vector_store %arg11[%c0_56, %c0_57], %167 {strides = array<i32>} : memref<8x128xf32, #tpu.memory_space<vmem>>, vector<8x128xf32>,
    return
  }
}

</mosaic_0001>

<bundles_post_ra>
// kernel: predict_model.1
= control target key start
LH: loop header
LB: loop body
LE: loop exit
PB: predicated region body
PF: predicated region fallthrough
CT: control target
= control target key end

     0   :  { %16 = vsyncpa [#allocation3], 0  ;;  %s2215_s0 = inlined_call_operand.vmem [shape: s32[8,64], index: 0, kind: input, shape index: {}]   ;;  %s2216_s1 = inlined_call_operand.hbm [shape: f32[4,8,128], index: 1, kind: input, shape index: {}]   ;;  %s2217_s2 = inlined_call_operand.hbm [shape: bf16[64,128], index: 2, kind: input, shape index: {}]   ;;  %s2218_s3 = inlined_call_operand.vmem [shape: bf16[2,128,128], index: 3, kind: input, shape index: {}]   ;;  %s2219_s4 = inlined_call_operand.hbm [shape: f32[2,1,128], index: 4, kind: input, shape index: {}]   ;;  %s2220_s5 = inlined_call_operand.hbm [shape: bf16[2,256,128], index: 5, kind: input, shape index: {}]   ;;  %s2221_s6 = inlined_call_operand.hbm [shape: f32[2,1,128], index: 6, kind: input, shape index: {}]   ;;  %s2222_s7 = inlined_call_operand.hbm [shape: bf16[128,128], index: 7, kind: input, shape index: {}]   ;;  %s2223_s8 = inlined_call_operand.hbm [shape: f32[1,128], index: 8, kind: input, shape index: {}]   ;;  %s2224_s9 = inlined_call_operand.hbm [shape: bf16[128,128], index: 9, kind: input, shape index: {}]   ;;  %s2225_s10 = inlined_call_operand.hbm [shape: f32[1,128], index: 10, kind: input, shape index: {}]   ;;  %s2226_s11 = inlined_call_operand.vmem [shape: f32[8,128], index: 11, kind: output, shape index: {}]  }
   0x1   :  { %17 = vsyncpa [#allocation5], 0 }
   0x2   :  { %18 = vsyncpa [#allocation8], 0 }
   0x3   :  { %19 = vsyncpa [#allocation11], 0 }
   0x4   :  { %20 = vsyncpa [#allocation14], 0  ;;  %s1883_s17 = smov [#allocation4]  }
   0x5   :  { %s40_s18 = sshll.u32 %s1883_s17, 4  ;;  %s41_s18 = int_to_ptr.vmem [resolvable:$true] %s40_s18 }
   0x6   :  { %s1701_s19 = scalar_lea.vmem %s41_s18, 512  ;;  %p1706_p1 = scmp.lt.s32.totalorder %s41_s18, %s41_s18 }
   0x7   :  { %p1702_p0 = scmp.ne.s32.totalorder %s41_s18, %s1701_s19  ;;  %p1707_p2 = scmp.lt.s32.totalorder %s1701_s19, %s1701_s19 }
   0x9   :  { %p1708_p3 = por %p1707_p2, %p1706_p1 }
   0xb   :  { %p1709_p4 = pnand %p1708_p3, %p1702_p0 }
   0xd   :  { %1712 = shalt.err (!%p1709_p4)
}
   0xe   :  { %s1884_s20 = smov 64   ;;  %s1885_s21 = smov 4  }
   0xf   :  { %46 = dma.hbm_to_vmem [thread:$0]  %s2217_s2, 512, %s41_s18, [#allocation5], %s1884_s20, %s1884_s20, %s1885_s21  }
  0x10   :  { %s1886_s24 = smov [#allocation7]   ;;  %s1887_s26 = smov [#allocation10]  }
  0x11   :  { %s66_s25 = sshll.u32 %s1886_s24, 4  ;;  %s90_s27 = sshll.u32 %s1887_s26, 4  ;;  %s67_s25 = int_to_ptr.vmem [resolvable:$true] %s66_s25  ;;  %s91_s27 = int_to_ptr.vmem [resolvable:$true] %s90_s27 }
  0x12   :  { %s1721_s28 = scalar_lea.vmem %s67_s25, 4096  ;;  %p1726_p6 = scmp.lt.s32.totalorder %s67_s25, %s67_s25 }
  0x13   :  { %p1722_p5 = scmp.ne.s32.totalorder %s67_s25, %s1721_s28  ;;  %p1727_p7 = scmp.lt.s32.totalorder %s1721_s28, %s1721_s28 }
  0x15   :  { %p1728_p8 = por %p1727_p7, %p1726_p6 }
  0x17   :  { %p1729_p9 = pnand %p1728_p8, %p1722_p5 }
  0x19   :  { %1732 = shalt.err (!%p1729_p9)
}
  0x1a   :  { %72 = dma.hbm_to_vmem [thread:$0]  %s2220_s5, 4096, %s67_s25, [#allocation8], %s1884_s20, %s1884_s20, %s1885_s21  }
  0x1b   :  { %s1741_s2 = scalar_lea.vmem %s91_s27, 1024  ;;  %p1746_p11 = scmp.lt.s32.totalorder %s91_s27, %s91_s27 }
  0x1c   :  { %p1742_p10 = scmp.ne.s32.totalorder %s91_s27, %s1741_s2  ;;  %p1747_p12 = scmp.lt.s32.totalorder %s1741_s2, %s1741_s2 }
  0x1e   :  { %p1748_p13 = por %p1747_p12, %p1746_p11 }
  0x20   :  { %p1749_p0 = pnand %p1748_p13, %p1742_p10 }
  0x22   :  { %1752 = shalt.err (!%p1749_p0)
}
  0x23   :  { %96 = dma.hbm_to_vmem [thread:$0]  %s2222_s7, 1024, %s91_s27, [#allocation11], %s1884_s20, %s1884_s20, %s1885_s21  }
  0x24   :  { %s1888_s14 = smov [#allocation13]   ;;  %s1889_s16 = smov [#allocation2]  }
  0x25   :  { %s112_s15 = sshll.u32 %s1888_s14, 4  ;;  %s28_s5 = sshll.u32 %s1889_s16, 4  ;;  %s113_s15 = int_to_ptr.vmem [resolvable:$true] %s112_s15  ;;  %s29_s5 = int_to_ptr.vmem [resolvable:$true] %s28_s5 }
  0x26   :  { %s1761_s17 = scalar_lea.vmem %s113_s15, 1024  ;;  %p1766_p2 = scmp.lt.s32.totalorder %s113_s15, %s113_s15 }
  0x27   :  { %p1762_p1 = scmp.ne.s32.totalorder %s113_s15, %s1761_s17  ;;  %p1767_p3 = scmp.lt.s32.totalorder %s1761_s17, %s1761_s17 }
  0x29   :  { %p1768_p4 = por %p1767_p3, %p1766_p2 }
  0x2b   :  { %p1769_p5 = pnand %p1768_p4, %p1762_p1 }
  0x2d   :  { %1772 = shalt.err (!%p1769_p5)
}
  0x2e   :  { %118 = dma.hbm_to_vmem [thread:$0]  %s2224_s9, 1024, %s113_s15, [#allocation14], %s1884_s20, %s1884_s20, %s1885_s21  }
  0x2f   :  { %s1781_s7 = scalar_lea.vmem %s29_s5, 512  ;;  %p1786_p7 = scmp.lt.s32.totalorder %s29_s5, %s29_s5 }
  0x30   :  { %p1782_p6 = scmp.ne.s32.totalorder %s29_s5, %s1781_s7  ;;  %p1787_p8 = scmp.lt.s32.totalorder %s1781_s7, %s1781_s7 }
  0x32   :  { %p1788_p9 = por %p1787_p8, %p1786_p7 }
  0x34   :  { %p1789_p10 = pnand %p1788_p9, %p1782_p6 }
  0x36   :  { %1792 = shalt.err (!%p1789_p10)
}
  0x37   :  { %s1890_s22 = smov 128   ;;  %s1891_s23 = smov 8  }
  0x38   :  { %34 = dma.hbm_to_vmem [thread:$0]  %s2216_s1, 512, %s29_s5, [#allocation3], %s1890_s22, %s1890_s22, %s1891_s23  }
  0x39   :  { %s1892_s26 = smov [#allocation6]  }
  0x3a   :  { %s54_s27 = sshll.u32 %s1892_s26, 4  ;;  %s55_s27 = int_to_ptr.vmem [resolvable:$true] %s54_s27 }
  0x3b   :  { %s1801_s28 = scalar_lea.vmem %s55_s27, 32  ;;  %p1806_p12 = scmp.lt.s32.totalorder %s55_s27, %s55_s27 }
  0x3c   :  { %p1802_p11 = scmp.ne.s32.totalorder %s55_s27, %s1801_s28  ;;  %p1807_p13 = scmp.lt.s32.totalorder %s1801_s28, %s1801_s28 }
  0x3e   :  { %p1808_p0 = por %p1807_p13, %p1806_p12 }
  0x40   :  { %p1809_p1 = pnand %p1808_p0, %p1802_p11 }
  0x42   :  { %1812 = shalt.err (!%p1809_p1)
}
  0x43   :  { %s1893_s9 = smov 16   ;;  %s1894_s20 = smov 1  }
  0x44   :  { %60 = dma.hbm_to_vmem [thread:$0]  %s2219_s4, 32, %s55_s27, [#allocation5], %s1893_s9, %s1893_s9, %s1894_s20  }
  0x45   :  { %s1895_s30 = smov [#allocation9]   ;;  %s1896_s12 = smov [#allocation12]  }
  0x46   :  { %s78_s2 = sshll.u32 %s1895_s30, 4  ;;  %s103_s1 = sshll.u32 %s1896_s12, 4  ;;  %s79_s2 = int_to_ptr.vmem [resolvable:$true] %s78_s2  ;;  %s104_s1 = int_to_ptr.vmem [resolvable:$true] %s103_s1 }
  0x47   :  { %s1821_s13 = scalar_lea.vmem %s79_s2, 32  ;;  %p1826_p3 = scmp.lt.s32.totalorder %s79_s2, %s79_s2 }
  0x48   :  { %p1822_p2 = scmp.ne.s32.totalorder %s79_s2, %s1821_s13  ;;  %p1827_p4 = scmp.lt.s32.totalorder %s1821_s13, %s1821_s13 }
  0x4a   :  { %p1828_p5 = por %p1827_p4, %p1826_p3 }
  0x4c   :  { %p1829_p6 = pnand %p1828_p5, %p1822_p2 }
  0x4e   :  { %1832 = shalt.err (!%p1829_p6)
}
  0x4f   :  { %84 = dma.hbm_to_vmem [thread:$0]  %s2221_s6, 32, %s79_s2, [#allocation8], %s1893_s9, %s1893_s9, %s1894_s20  }
  0x50   :  { %s1841_s16 = scalar_lea.vmem %s104_s1, 16  ;;  %s1845_s4 = scalar_lea.vmem %s104_s1, 32 }
  0x51   :  { %p1842_p7 = scmp.ne.s32.totalorder %s104_s1, %s1841_s16  ;;  %p1846_p8 = scmp.lt.s32.totalorder %s104_s1, %s104_s1 }
  0x52   :  { %p1847_p9 = scmp.lt.s32.totalorder %s1845_s4, %s1841_s16 }
  0x54   :  { %p1848_p10 = por %p1847_p9, %p1846_p8 }
  0x56   :  { %p1849_p11 = pnand %p1848_p10, %p1842_p7 }
  0x58   :  { %1852 = shalt.err (!%p1849_p11)
}
  0x59   :  { %106 = dma.hbm_to_vmem [thread:$0]  %s2223_s8, 16, %s104_s1, [#allocation11]  }
  0x5a   :  { %s1897_s18 = smov [#allocation15]  }
  0x5b   :  { %s125_s19 = sshll.u32 %s1897_s18, 4  ;;  %s126_s19 = int_to_ptr.vmem [resolvable:$true] %s125_s19 }
  0x5c   :  { %s1861_s7 = scalar_lea.vmem %s126_s19, 16  ;;  %s1865_s22 = scalar_lea.vmem %s126_s19, 32 }
  0x5d   :  { %p1862_p12 = scmp.ne.s32.totalorder %s126_s19, %s1861_s7  ;;  %p1866_p13 = scmp.lt.s32.totalorder %s126_s19, %s126_s19 }
  0x5e   :  { %p1867_p0 = scmp.lt.s32.totalorder %s1865_s22, %s1861_s7 }
  0x60   :  { %p1868_p1 = por %p1867_p0, %p1866_p13 }
  0x62   :  { %p1869_p2 = pnand %p1868_p1, %p1862_p12 }
  0x64   :  { %1872 = shalt.err (!%p1869_p2)
}
  0x65   :  { %128 = dma.hbm_to_vmem [thread:$0]  %s2225_s10, 16, %s126_s19, [#allocation14]  }
  0x66   :  { %1873 = dma.done.wait [#allocation3], 512  }
  0x67   :  { %1874 = vsyncadd [#allocation3], 4294966784 }
  0x68   :  { %1875 = dma.done.wait [#allocation5], 544  }
  0x69   :  { %1876 = vsyncadd [#allocation5], 4294966752 }
  0x6a   :  { %1877 = dma.done.wait [#allocation8], 4128  }
  0x6b   :  { %1878 = vsyncadd [#allocation8], 4294963168 }
  0x6c   :  { %1879 = dma.done.wait [#allocation11], 1040  }
  0x6d   :  { %1880 = vsyncadd [#allocation11], 4294966256 }
  0x6e   :  { %1881 = dma.done.wait [#allocation14], 1040  }
  0x6f   :  { %1882 = vsyncadd [#allocation14], 4294966256  ;;  %v1898_v0 = vmov 0.0   ;;  %vm1899_vm0 = vmmov 0   ;;  %v157_v1 = vlaneseq  ;;  %v1617_v3 = vld [vmem:[#allocation4 + $0x18] sm:$0xff]   ;;  %v1618_v4 = vld [vmem:[#allocation4 + $0x10] sm:$0xff]  }
  0x70   :  { %1507 = vmatprep.subr.bf16.mxu0 %v1898_v0  ;;  %1515 = vmatprep.mubr.msk.bf16.mxu0 %vm1899_vm0, %v1898_v0  ;;  %v171_v6 = vld [vmem:[%s2215_s0] sm:$0xff]  ;;  %v1621_v7 = vld [vmem:[%s2218_s3 + $0x38] sm:$0xff]   ;;  %v1619_v8 = vld [vmem:[#allocation4 + $0x8] sm:$0xff]   ;;  %vm208_vm2 = vcmask 523264   ;;  %v1900_v48 = vmov 1983009808  }
  0x71   :  { %1519 = vmatprep.subr.bf16.mxu1 %v1898_v0  ;;  %1535 = vmatprep.mubr.msk.bf16.mxu1 %vm1899_vm0, %v1898_v0  ;;  %v158_v2 = vand.u32 127, %v157_v1  ;;  %v1622_v9 = vld [vmem:[%s2218_s3 + $0x30] sm:$0xff]   ;;  %v1620_v10 = vld [vmem:[#allocation4] sm:$0xff]   ;;  %v1623_v12 = vld [vmem:[%s2218_s3 + $0x28] sm:$0xff]   ;;  %v372_v49 = vunpack.c.l.s4 %v1900_v48  ;;  %v375_v51 = vshrl.u32 %v157_v1, 7 }
  0x72   :  { %1508 = vmatpush3.bf16.msra.mxu0 %v1617_v3  ;;  %1520 = vmatpush3.bf16.msra.mxu1 %v1621_v7  ;;  %v1624_v14 = vld [vmem:[%s2218_s3 + $0x20] sm:$0xff]   ;;  %v1625_v15 = vld [vmem:[%s2218_s3 + $0x18] sm:$0xff]   ;;  %v1626_v16 = vld [vmem:[%s2218_s3 + $0x10] sm:$0xff]  }
  0x73   :  { %1509 = vmatprep.subr.bf16.mxu0 %v1898_v0  ;;  %v163_v5 = vand.u32 15, %v158_v2  ;;  %1521 = vmatprep.subr.bf16.mxu1 %v1898_v0  ;;  %v1627_v17 = vld [vmem:[%s2218_s3 + $0x8] sm:$0xff]   ;;  %v1628_v18 = vld [vmem:[%s2218_s3] sm:$0xff]   ;;  %v1630_v26 = vld [vmem:[#allocation10 + $0x30] sm:$0xff]   ;;  %v373_v50 = vunpack.c.0.s8 %v372_v49 }
  0x74   :  { %v1637_v19 = vld [vmem:[#allocation7 + $0x78] sm:$0xff]   ;;  %v1631_v28 = vld [vmem:[#allocation10 + $0x28] sm:$0xff]   ;;  %v1632_v29 = vld [vmem:[#allocation10 + $0x20] sm:$0xff]  }
  0x75   :  { %vm172_vm1 = vcmp.eq.s32.totalorder %v163_v5, %v171_v6  ;;  %v1638_v20 = vld [vmem:[#allocation7 + $0x38] sm:$0xff]   ;;  %v1635_v32 = vld [vmem:[#allocation10 + $0x8] sm:$0xff]   ;;  %v1636_v33 = vld [vmem:[#allocation10] sm:$0xff]   ;;  %v2061_v53 = vsub.s32 %v373_v50, %v375_v51 }
  0x76   :  { %1510 = vmatpush3.bf16.msra.mxu0 %v1618_v4  ;;  %v1330_v11 = vsel %vm172_vm1, 1.0, %v1898_v0  ;;  %1522 = vmatpush3.bf16.msra.mxu1 %v1622_v9  ;;  %v1629_v22 = vld [vmem:[#allocation10 + $0x38] sm:$0xff]   ;;  %v1634_v31 = vld [vmem:[#allocation10 + $0x10] sm:$0xff]   ;;  %v1641_v36 = vld [vmem:[#allocation7 + $0x68] sm:$0xff]  }
  0x77   :  { %1511 = vmatprep.subr.bf16.mxu0 %v1898_v0  ;;  %1523 = vmatprep.subr.bf16.mxu1 %v1898_v0  ;;  %v175_v13 = vpack.c.bf16 %v1330_v11, %v1330_v11  ;;  %v1633_v30 = vld [vmem:[#allocation10 + $0x18] sm:$0xff]   ;;  %v1639_v34 = vld [vmem:[#allocation7 + $0x70] sm:$0xff]   ;;  %v1642_v37 = vld [vmem:[#allocation7 + $0x28] sm:$0xff]  }
  0x78   :  { %v1640_v35 = vld [vmem:[#allocation7 + $0x30] sm:$0xff]   ;;  %v1643_v38 = vld [vmem:[#allocation7 + $0x60] sm:$0xff]   ;;  %v1645_v40 = vld [vmem:[#allocation7 + $0x58] sm:$0xff]  }
  0x79   :  { %v1644_v39 = vld [vmem:[#allocation7 + $0x20] sm:$0xff]   ;;  %v1646_v41 = vld [vmem:[#allocation7 + $0x18] sm:$0xff]   ;;  %v1647_v42 = vld [vmem:[#allocation7 + $0x50] sm:$0xff]  }
  0x7a   :  { %1512 = vmatpush3.bf16.msra.mxu0 %v1619_v8  ;;  %1524 = vmatpush3.bf16.msra.mxu1 %v1623_v12  ;;  %v1648_v43 = vld [vmem:[#allocation7 + $0x10] sm:$0xff]   ;;  %v1649_v44 = vld [vmem:[#allocation7 + $0x48] sm:$0xff]   ;;  %v1651_v46 = vld [vmem:[#allocation7 + $0x40] sm:$0xff]  }
  0x7b   :  { %1513 = vmatprep.subr.bf16.mxu0 %v1898_v0  ;;  %1525 = vmatprep.subr.bf16.mxu1 %v1898_v0  ;;  %v1650_v45 = vld [vmem:[#allocation7 + $0x8] sm:$0xff]   ;;  %v1652_v47 = vld [vmem:[#allocation7] sm:$0xff]   ;;  %v255_v58 = vld [vmem:[#allocation2 + $0x18] sm:$0xff] }
  0x7c   :  { %v252_v52 = vld [vmem:[#allocation2] sm:$0xff]  ;;  %v253_v54 = vld [vmem:[#allocation2 + $0x8] sm:$0xff]  ;;  %v254_v56 = vld [vmem:[#allocation2 + $0x10] sm:$0xff]  ;;  %v481_v3 = vcombine.high %v255_v58, %v255_v58  ;;  %v2090_v11 = vrot.slane %v255_v58, %v2061_v53 }
  0x7d   :  { %v370_v55 = vcombine.high %v252_v52, %v252_v52  ;;  %v410_v57 = vcombine.high %v253_v54, %v253_v54  ;;  %v2064_v59 = vrot.slane %v252_v52, %v2061_v53  ;;  %v1336_v60 = vld [vmem:[#allocation6] ss:$0 sm:$0xff]  ;;  %v449_v62 = vcombine.high %v254_v56, %v254_v56 }
  0x7e   :  { %1514 = vmatpush3.bf16.msra.mxu0 %v1620_v10  ;;  %1526 = vmatpush3.bf16.msra.mxu1 %v1624_v14  ;;  %v2070_v2 = vrot.slane %v253_v54, %v2061_v53  ;;  %v2084_v8 = vrot.slane %v254_v56, %v2061_v53 }
  0x7f   :  { %1527 = vmatprep.subr.bf16.mxu1 %v1898_v0  ;;  %1436 = vmatprep.subr.bf16.mxu0 %v1637_v19  ;;  %v2067_v61 = vrot.slane %v370_v55, %v2061_v53  ;;  %v2073_v1 = vrot.slane %v410_v57, %v2061_v53  ;;  %v2077_v5 = vcombine.high %v2064_v59, %v2064_v59 }
  0x80   :  { %v2087_v9 = vrot.slane %v449_v62, %v2061_v53 }
  0x81   :  { %1516 = vmatmul.mubr.msk.bf16.vlgmr.msra.gmra.mxu0 %vm208_vm2, %v175_v13  ;;  %v2081_v7 = vcombine.high %v2067_v61, %v2067_v61  ;;  %v2094_v13 = vcombine.high %v2070_v2, %v2070_v2  ;;  %v2098_v14 = vcombine.high %v2073_v1, %v2073_v1 }
  0x82   :  { %1528 = vmatpush3.bf16.msra.mxu1 %v1625_v15  ;;  %1437 = vmatpush3.bf16.msra.mxu0 %v1638_v20  ;;  %v2101_v15 = vrot.slane %v481_v3, %v2061_v53 }
  0x83   :  { %1529 = vmatprep.subr.bf16.mxu1 %v1898_v0  ;;  %1438 = vmatprep.subr.bf16.mxu0 %v1639_v34 }
  0x86   :  { %1530 = vmatpush3.bf16.msra.mxu1 %v1626_v16  ;;  %1439 = vmatpush3.bf16.msra.mxu0 %v1640_v35 }
  0x87   :  { %1531 = vmatprep.subr.bf16.mxu1 %v1898_v0  ;;  %1440 = vmatprep.subr.bf16.mxu0 %v1641_v36 }
  0x8a   :  { %1532 = vmatpush3.bf16.msra.mxu1 %v1627_v17  ;;  %1441 = vmatpush3.bf16.msra.mxu0 %v1642_v37 }
  0x8b   :  { %1533 = vmatprep.subr.bf16.mxu1 %v1898_v0  ;;  %1442 = vmatprep.subr.bf16.mxu0 %v1643_v38 }
  0x8e   :  { %1534 = vmatpush3.bf16.msra.mxu1 %v1628_v18  ;;  %1443 = vmatpush3.bf16.msra.mxu0 %v1644_v39 }
  0x8f   :  { %1539 = vmatprep.subr.bf16.mxu1 %v1898_v0  ;;  %1444 = vmatprep.subr.bf16.mxu0 %v1645_v40 }
  0x92   :  { %1445 = vmatpush3.bf16.msra.mxu0 %v1646_v41 }
  0x93   :  { %1446 = vmatprep.subr.bf16.mxu0 %v1647_v42 }
  0x96   :  { %1447 = vmatpush3.bf16.msra.mxu0 %v1648_v43 }
  0x97   :  { %1448 = vmatprep.subr.bf16.mxu0 %v1649_v44 }
  0x9a   :  { %1449 = vmatpush3.bf16.msra.mxu0 %v1650_v45 }
  0x9b   :  { %1450 = vmatprep.subr.bf16.mxu0 %v1651_v46 }
  0x9e   :  { %1451 = vmatpush3.bf16.msra.mxu0 %v1652_v47 }
  0x9f   :  { %1559 = vmatprep.subr.bf16.mxu0 %v1898_v0 }
 0x141   :  { %v246_v21 = vpop.f32.mrf.mxu0 }
 0x142   :  { %v2046_v23 = vpack.c.bf16 %v246_v21, %v246_v21 }
 0x143   :  { %v1517_v24 = vpop.f32.mrf.mxu0 }
 0x144   :  { %1536 = vmatmul.mubr.bf16.vlgmr.msra.gmra.mxu1 %v2046_v23  ;;  %v2110_v24 = vcombine.high %v2084_v8, %v2084_v8 }
 0x145   :  { %1540 = vmatpush3.bf16.msra.mxu1 %v1629_v22  ;;  %v249_v25 = vpop.f32.mrf.mxu0  ;;  %1555 = vmatprep.mubr.msk.bf16.mxu1 %vm1899_vm0, %v1898_v0 }
 0x146   :  { %1541 = vmatprep.subr.bf16.mxu1 %v1898_v0  ;;  %v2114_v25 = vcombine.high %v2087_v9, %v2087_v9 }
 0x147   :  { %v1518_v27 = vpop.f32.mrf.mxu0 }
 0x149   :  { %1542 = vmatpush3.bf16.msra.mxu1 %v1630_v26 }
 0x14a   :  { %1543 = vmatprep.subr.bf16.mxu1 %v1898_v0 }
 0x14d   :  { %1544 = vmatpush3.bf16.msra.mxu1 %v1631_v28 }
 0x14e   :  { %1545 = vmatprep.subr.bf16.mxu1 %v1898_v0 }
 0x151   :  { %1546 = vmatpush3.bf16.msra.mxu1 %v1632_v29  ;;  %v2119_v29 = vcombine.high %v2090_v11, %v2090_v11 }
 0x152   :  { %1547 = vmatprep.subr.bf16.mxu1 %v1898_v0 }
 0x155   :  { %1548 = vmatpush3.bf16.msra.mxu1 %v1633_v30 }
 0x156   :  { %1549 = vmatprep.subr.bf16.mxu1 %v1898_v0 }
 0x159   :  { %1550 = vmatpush3.bf16.msra.mxu1 %v1634_v31 }
 0x15a   :  { %1551 = vmatprep.subr.bf16.mxu1 %v1898_v0 }
 0x15d   :  { %1552 = vmatpush3.bf16.msra.mxu1 %v1635_v32 }
 0x15e   :  { %1553 = vmatprep.subr.bf16.mxu1 %v1898_v0 }
 0x161   :  { %1554 = vmatpush3.bf16.msra.mxu1 %v1636_v33  ;;  %v2123_v33 = vcombine.high %v2101_v15, %v2101_v15 }
 0x164   :  { %1556 = vmatmul.mubr.bf16.vlgmr.msra.gmra.mxu1 %v2046_v23 }
 0x204   :  { %v362_v63 = vpop.f32.mrf.mxu1 }
 0x205   :  { %v363_v4 = vadd.f32 %v1336_v60, %v362_v63 }
 0x206   :  { %v1537_v6 = vpop.f32.mrf.mxu1 }
 0x207   :  { %v368_v10 = vmax.f32 %v363_v4, 0.0 }
 0x208   :  { %v365_v12 = vpop.f32.mrf.mxu1 }
 0x209   :  { %v406_v16 = vrot.slane %v368_v10, %v2061_v53  ;;  %v439_v17 = vcombine.high %v368_v10, %v368_v10  ;;  %v391_v18 = vadd.f32 %v2064_v59, %v368_v10  ;;  %v392_v19 = vadd.f32 %v2077_v5, %v368_v10 }
 0x20a   :  { %v1538_v20 = vpop.f32.mrf.mxu1  ;;  %v393_v21 = vadd.f32 %v2067_v61, %v368_v10  ;;  %v394_v22 = vadd.f32 %v2081_v7, %v368_v10 }
 0x20b   :  { %v407_v26 = vcombine.high %v406_v16, %v406_v16  ;;  %v446_v27 = vrot.slane %v439_v17, %v2061_v53  ;;  %v395_v28 = vmax.f32 %v391_v18, -1e+30  ;;  %v396_v30 = vmax.f32 %v392_v19, -1e+30  ;;  %v1657_v19 = vld [vmem:[%s2218_s3 + $0x78] sm:$0xff]   ;;  %v1658_v20 = vld [vmem:[%s2218_s3 + $0x70] sm:$0xff]  }
 0x20c   :  { %v397_v31 = vmax.f32 %v393_v21, -1e+30  ;;  %v398_v32 = vmax.f32 %v394_v22, -1e+30 }
 0x20d   :  { %v431_v34 = vadd.f32 %v2070_v2, %v407_v26  ;;  %v432_v35 = vadd.f32 %v2094_v13, %v407_v26  ;;  %v433_v36 = vadd.f32 %v2073_v1, %v407_v26  ;;  %v434_v37 = vadd.f32 %v2098_v14, %v407_v26  ;;  %v1659_v26 = vld [vmem:[%s2218_s3 + $0x68] sm:$0xff]  }
 0x20e   :  { %v470_v38 = vadd.f32 %v2084_v8, %v446_v27  ;;  %v471_v39 = vadd.f32 %v2110_v24, %v446_v27  ;;  %v472_v40 = vadd.f32 %v2087_v9, %v446_v27  ;;  %v473_v41 = vadd.f32 %v2114_v25, %v446_v27 }
 0x20f   :  { %v435_v42 = vmax.f32 %v395_v28, %v431_v34  ;;  %v436_v43 = vmax.f32 %v396_v30, %v432_v35  ;;  %v437_v44 = vmax.f32 %v397_v31, %v433_v36  ;;  %v438_v45 = vmax.f32 %v398_v32, %v434_v37  ;;  %v1660_v28 = vld [vmem:[%s2218_s3 + $0x60] sm:$0xff]   ;;  %v1661_v30 = vld [vmem:[%s2218_s3 + $0x58] sm:$0xff]   ;;  %v1662_v31 = vld [vmem:[%s2218_s3 + $0x50] sm:$0xff]  }
 0x210   :  { %v478_v46 = vcombine.high %v446_v27, %v446_v27  ;;  %v1663_v32 = vld [vmem:[%s2218_s3 + $0x48] sm:$0xff]   ;;  %v1664_v34 = vld [vmem:[%s2218_s3 + $0x40] sm:$0xff]  }
 0x211   :  { %v474_v47 = vmax.f32 %v435_v42, %v470_v38  ;;  %v475_v48 = vmax.f32 %v436_v43, %v471_v39  ;;  %v476_v49 = vmax.f32 %v437_v44, %v472_v40  ;;  %v477_v50 = vmax.f32 %v438_v45, %v473_v41  ;;  %v1665_v35 = vld [vmem:[#allocation7 + $0xf8] sm:$0xff]   ;;  %v1345_v38 = vld [vmem:[#allocation9] ss:$0 sm:$0xff]  ;;  %v1362_v41 = vld [vmem:[#allocation12] ss:$0 sm:$0xff] }
 0x212   :  { %v502_v51 = vadd.f32 %v2090_v11, %v478_v46  ;;  %v503_v52 = vadd.f32 %v2119_v29, %v478_v46  ;;  %v504_v54 = vadd.f32 %v2101_v15, %v478_v46  ;;  %v505_v55 = vadd.f32 %v2123_v33, %v478_v46  ;;  %v1666_v36 = vld [vmem:[#allocation7 + $0xb8] sm:$0xff]   ;;  %1476 = vmatprep.subr.bf16.mxu1 %v1665_v35 }
 0x213   :  { %1477 = vmatpush3.bf16.msra.mxu1 %v1666_v36 }
 0x214   :  { %v506_v56 = vmax.f32 %v474_v47, %v502_v51  ;;  %v507_v57 = vmax.f32 %v475_v48, %v503_v52  ;;  %v508_v58 = vmax.f32 %v476_v49, %v504_v54  ;;  %v509_v60 = vmax.f32 %v477_v50, %v505_v55  ;;  %v1667_v49 = vld [vmem:[#allocation7 + $0xf0] sm:$0xff]   ;;  %v1669_v51 = vld [vmem:[#allocation7 + $0xe8] sm:$0xff]   ;;  %v1671_v54 = vld [vmem:[#allocation7 + $0xe0] sm:$0xff]  }
 0x215   :  { %v1668_v50 = vld [vmem:[#allocation7 + $0xb0] sm:$0xff]   ;;  %1478 = vmatprep.subr.bf16.mxu1 %v1667_v49  ;;  %v1670_v52 = vld [vmem:[#allocation7 + $0xa8] sm:$0xff]   ;;  %v1672_v55 = vld [vmem:[#allocation7 + $0xa0] sm:$0xff]  }
 0x216   :  { %v510_v62 = vmax.f32 %v506_v56, 0.0  ;;  %v511_v63 = vmax.f32 %v507_v57, 0.0  ;;  %v512_v3 = vmax.f32 %v508_v58, 0.0  ;;  %v513_v4 = vmax.f32 %v509_v60, 0.0  ;;  %v1673_v56 = vld [vmem:[#allocation7 + $0xd8] sm:$0xff]   ;;  %v1675_v58 = vld [vmem:[#allocation7 + $0xd0] sm:$0xff]  }
 0x217   :  { %1479 = vmatpush3.bf16.msra.mxu1 %v1668_v50  ;;  %v1674_v57 = vld [vmem:[#allocation7 + $0x98] sm:$0xff]   ;;  %v1676_v60 = vld [vmem:[#allocation7 + $0x90] sm:$0xff]  }
 0x218   :  { %v518_v6 = vcombine.low %v510_v62, %v511_v63  ;;  %v519_v10 = vcombine.low %v512_v3, %v513_v4  ;;  %1480 = vmatprep.subr.bf16.mxu1 %v1669_v51  ;;  %v1677_v62 = vld [vmem:[#allocation7 + $0xc8] sm:$0xff]   ;;  %v1679_v3 = vld [vmem:[#allocation7 + $0xc0] sm:$0xff]  }
 0x219   :  { %v1678_v63 = vld [vmem:[#allocation7 + $0x88] sm:$0xff]   ;;  %v1680_v4 = vld [vmem:[#allocation7 + $0x80] sm:$0xff]  }
 0x21a   :  { %v526_v12 = vrot.slane %v518_v6, %v2061_v53  ;;  %v533_v16 = vrot.slane %v519_v10, %v2061_v53  ;;  %v1681_v6 = vld [vmem:[#allocation13 + $0x38] sm:$0xff]   ;;  %v1682_v10 = vld [vmem:[#allocation13 + $0x30] sm:$0xff]  }
 0x21b   :  { %1481 = vmatpush3.bf16.msra.mxu1 %v1670_v52 }
 0x21c   :  { %v534_v17 = vcombine.low %v526_v12, %v533_v16  ;;  %1482 = vmatprep.subr.bf16.mxu1 %v1671_v54  ;;  %v1683_v12 = vld [vmem:[#allocation13 + $0x28] sm:$0xff]   ;;  %v1684_v16 = vld [vmem:[#allocation13 + $0x20] sm:$0xff]  }
 0x21e   :  { %v536_v18 = vpack.c.bf16 %v534_v17, %v534_v17  ;;  %v1685_v17 = vld [vmem:[#allocation13 + $0x18] sm:$0xff]  }
 0x21f   :  { %1483 = vmatpush3.bf16.msra.mxu1 %v1672_v55 }
 0x220   :  { %704 = vmatprep.mubr.bf16.mxu0 %v536_v18  ;;  %1484 = vmatprep.subr.bf16.mxu1 %v1673_v56  ;;  %v1387_v18 = vld [vmem:[#allocation6 + $0x1] ss:$0 sm:$0xff] }
 0x221   :  { %705 = vmatmul.mubr.bf16.vlgmr.msra.gmra.mxu0 %v2046_v23 }
 0x222   :  { %1560 = vmatpush3.bf16.msra.mxu0 %v1657_v19  ;;  %1575 = vmatprep.mubr.msk.bf16.mxu0 %vm1899_vm0, %v1898_v0 }
 0x223   :  { %1561 = vmatprep.subr.bf16.mxu0 %v1898_v0  ;;  %1485 = vmatpush3.bf16.msra.mxu1 %v1674_v57 }
 0x224   :  { %v817_v21 = vpop.f32.mrf.mxu1  ;;  %1486 = vmatprep.subr.bf16.mxu1 %v1675_v58 }
 0x225   :  { %v818_v45 = vadd.f32 %v1362_v41, %v817_v21 }
 0x226   :  { %v1557_v22 = vpop.f32.mrf.mxu1  ;;  %1562 = vmatpush3.bf16.msra.mxu0 %v1658_v20 }
 0x227   :  { %1563 = vmatprep.subr.bf16.mxu0 %v1898_v0  ;;  %1487 = vmatpush3.bf16.msra.mxu1 %v1676_v60 }
 0x228   :  { %v820_v23 = vpop.f32.mrf.mxu1  ;;  %1488 = vmatprep.subr.bf16.mxu1 %v1677_v62 }
 0x22a   :  { %v1558_v27 = vpop.f32.mrf.mxu1  ;;  %1564 = vmatpush3.bf16.msra.mxu0 %v1659_v26 }
 0x22b   :  { %1565 = vmatprep.subr.bf16.mxu0 %v1898_v0  ;;  %1489 = vmatpush3.bf16.msra.mxu1 %v1678_v63 }
 0x22c   :  { %1490 = vmatprep.subr.bf16.mxu1 %v1679_v3 }
 0x22e   :  { %1566 = vmatpush3.bf16.msra.mxu0 %v1660_v28 }
 0x22f   :  { %1567 = vmatprep.subr.bf16.mxu0 %v1898_v0  ;;  %1491 = vmatpush3.bf16.msra.mxu1 %v1680_v4 }
 0x232   :  { %1568 = vmatpush3.bf16.msra.mxu0 %v1661_v30 }
 0x233   :  { %1569 = vmatprep.subr.bf16.mxu0 %v1898_v0 }
 0x236   :  { %1570 = vmatpush3.bf16.msra.mxu0 %v1662_v31 }
 0x237   :  { %1571 = vmatprep.subr.bf16.mxu0 %v1898_v0 }
 0x23a   :  { %1572 = vmatpush3.bf16.msra.mxu0 %v1663_v32 }
 0x23b   :  { %1573 = vmatprep.subr.bf16.mxu0 %v1898_v0 }
 0x23e   :  { %1574 = vmatpush3.bf16.msra.mxu0 %v1664_v34 }
 0x23f   :  { %1579 = vmatprep.subr.bf16.mxu0 %v1898_v0 }
 0x2e1   :  { %v1452_v37 = vpop.f32.mrf.mxu0 }
 0x2e3   :  { %v1453_v39 = vpop.f32.mrf.mxu0 }
 0x2e4   :  { %v1454_v40 = vadd.f32 %v1453_v39, %v1452_v37 }
 0x2e5   :  { %v1455_v42 = vpop.f32.mrf.mxu0 }
 0x2e6   :  { %v707_v43 = vadd.f32 %v1454_v40, %v1345_v38 }
 0x2e7   :  { %v1456_v44 = vpop.f32.mrf.mxu0 }
 0x2e8   :  { %v823_v46 = vmax.f32 %v707_v43, 0.0 }
 0x2ea   :  { %v2174_v47 = vadd.f32 %v823_v46, %v818_v45 }
 0x2ec   :  { %v2178_v48 = vpack.c.bf16 %v2174_v47, %v2174_v47 }
 0x2ee   :  { %1576 = vmatmul.mubr.bf16.vlgmr.msra.gmra.mxu0 %v2178_v48 }
 0x2ef   :  { %1595 = vmatprep.mubr.msk.bf16.mxu0 %vm1899_vm0, %v1898_v0  ;;  %1580 = vmatpush3.bf16.msra.mxu0 %v1681_v6 }
 0x2f0   :  { %1581 = vmatprep.subr.bf16.mxu0 %v1898_v0 }
 0x2f3   :  { %1582 = vmatpush3.bf16.msra.mxu0 %v1682_v10  ;;  %v1688_v10 = vld [vmem:[#allocation13] sm:$0xff]  }
 0x2f4   :  { %1583 = vmatprep.subr.bf16.mxu0 %v1898_v0 }
 0x2f7   :  { %1584 = vmatpush3.bf16.msra.mxu0 %v1683_v12 }
 0x2f8   :  { %1585 = vmatprep.subr.bf16.mxu0 %v1898_v0 }
 0x2fb   :  { %1586 = vmatpush3.bf16.msra.mxu0 %v1684_v16  ;;  %v1396_v16 = vld [vmem:[#allocation9 + $0x1] ss:$0 sm:$0xff] }
 0x2fc   :  { %1587 = vmatprep.subr.bf16.mxu0 %v1898_v0 }
 0x2ff   :  { %1588 = vmatpush3.bf16.msra.mxu0 %v1685_v17 }
 0x300   :  { %1589 = vmatprep.subr.bf16.mxu0 %v1898_v0 }
 0x3ae   :  { %v933_v19 = vpop.f32.mrf.mxu0 }
 0x3af   :  { %v934_v20 = vadd.f32 %v1387_v18, %v933_v19 }
 0x3b0   :  { %v1577_v21 = vpop.f32.mrf.mxu0 }
 0x3b1   :  { %v939_v22 = vmax.f32 %v934_v20, 0.0 }
 0x3b2   :  { %v936_v26 = vpop.f32.mrf.mxu0 }
 0x3b3   :  { %v955_v23 = vrot.slane %v939_v22, %v2061_v53  ;;  %v966_v27 = vcombine.high %v939_v22, %v939_v22  ;;  %v940_v28 = vadd.f32 %v939_v22, %v2064_v59  ;;  %v941_v30 = vadd.f32 %v939_v22, %v2077_v5  ;;  %v1413_v26 = vld [vmem:[#allocation15] ss:$0 sm:$0xff] }
 0x3b4   :  { %v1578_v31 = vpop.f32.mrf.mxu0  ;;  %v942_v32 = vadd.f32 %v939_v22, %v2067_v61  ;;  %v943_v34 = vadd.f32 %v939_v22, %v2081_v7 }
 0x3b5   :  { %v956_v35 = vcombine.high %v955_v23, %v955_v23  ;;  %v973_v36 = vrot.slane %v966_v27, %v2061_v53  ;;  %v944_v37 = vmax.f32 %v940_v28, -1e+30  ;;  %v945_v38 = vmax.f32 %v941_v30, -1e+30 }
 0x3b6   :  { %v946_v39 = vmax.f32 %v942_v32, -1e+30  ;;  %v947_v40 = vmax.f32 %v943_v34, -1e+30 }
 0x3b7   :  { %v958_v41 = vadd.f32 %v956_v35, %v2070_v2  ;;  %v959_v42 = vadd.f32 %v956_v35, %v2094_v13  ;;  %v960_v59 = vadd.f32 %v956_v35, %v2073_v1  ;;  %v961_v5 = vadd.f32 %v956_v35, %v2098_v14 }
 0x3b8   :  { %v975_v43 = vadd.f32 %v973_v36, %v2084_v8  ;;  %v976_v61 = vadd.f32 %v973_v36, %v2110_v24  ;;  %v977_v7 = vadd.f32 %v973_v36, %v2087_v9  ;;  %v978_v44 = vadd.f32 %v973_v36, %v2114_v25 }
 0x3b9   :  { %v962_v45 = vmax.f32 %v944_v37, %v958_v41  ;;  %v963_v46 = vmax.f32 %v945_v38, %v959_v42  ;;  %v964_v49 = vmax.f32 %v946_v39, %v960_v59  ;;  %v965_v50 = vmax.f32 %v947_v40, %v961_v5 }
 0x3ba   :  { %v983_v51 = vcombine.high %v973_v36, %v973_v36 }
 0x3bb   :  { %v979_v2 = vmax.f32 %v962_v45, %v975_v43  ;;  %v980_v52 = vmax.f32 %v963_v46, %v976_v61  ;;  %v981_v13 = vmax.f32 %v964_v49, %v977_v7  ;;  %v982_v54 = vmax.f32 %v965_v50, %v978_v44 }
 0x3bc   :  { %v985_v1 = vadd.f32 %v983_v51, %v2090_v11  ;;  %v986_v14 = vadd.f32 %v983_v51, %v2119_v29  ;;  %v987_v8 = vadd.f32 %v983_v51, %v2101_v15  ;;  %v988_v24 = vadd.f32 %v983_v51, %v2123_v33  ;;  %v1686_v15 = vld [vmem:[#allocation13 + $0x10] sm:$0xff]   ;;  %v1687_v33 = vld [vmem:[#allocation13 + $0x8] sm:$0xff]  }
 0x3bd   :  { %1590 = vmatpush3.bf16.msra.mxu0 %v1686_v15 }
 0x3be   :  { %v989_v9 = vmax.f32 %v979_v2, %v985_v1  ;;  %v990_v55 = vmax.f32 %v980_v52, %v986_v14  ;;  %v991_v25 = vmax.f32 %v981_v13, %v987_v8  ;;  %v992_v56 = vmax.f32 %v982_v54, %v988_v24  ;;  %1591 = vmatprep.subr.bf16.mxu0 %v1898_v0 }
 0x3c0   :  { %v993_v57 = vmax.f32 %v989_v9, 0.0  ;;  %v994_v58 = vmax.f32 %v990_v55, 0.0  ;;  %v995_v60 = vmax.f32 %v991_v25, 0.0  ;;  %v996_v62 = vmax.f32 %v992_v56, 0.0 }
 0x3c1   :  { %1592 = vmatpush3.bf16.msra.mxu0 %v1687_v33 }
 0x3c2   :  { %v1001_v63 = vcombine.low %v993_v57, %v994_v58  ;;  %v1002_v3 = vcombine.low %v995_v60, %v996_v62  ;;  %1593 = vmatprep.subr.bf16.mxu0 %v1898_v0 }
 0x3c4   :  { %v1009_v4 = vrot.slane %v1001_v63, %v2061_v53  ;;  %v1016_v11 = vrot.slane %v1002_v3, %v2061_v53 }
 0x3c5   :  { %1594 = vmatpush3.bf16.msra.mxu0 %v1688_v10 }
 0x3c6   :  { %v1017_v6 = vcombine.low %v1009_v4, %v1016_v11 }
 0x3c8   :  { %v1019_v29 = vpack.c.bf16 %v1017_v6, %v1017_v6 }
 0x3ca   :  { %1189 = vmatprep.mubr.bf16.mxu1 %v1019_v29 }
 0x3cb   :  { %1190 = vmatmul.mubr.bf16.vlgmr.msra.gmra.mxu1 %v2178_v48 }
 0x48b   :  { %v1492_v12 = vpop.f32.mrf.mxu1 }
 0x48d   :  { %v1493_v17 = vpop.f32.mrf.mxu1 }
 0x48e   :  { %v1494_v18 = vadd.f32 %v1493_v17, %v1492_v12 }
 0x48f   :  { %v1495_v53 = vpop.f32.mrf.mxu1 }
 0x490   :  { %v1192_v19 = vadd.f32 %v1494_v18, %v1396_v16 }
 0x491   :  { %v1496_v20 = vpop.f32.mrf.mxu1 }
 0x492   :  { %v1197_v21 = vmax.f32 %v1192_v19, 0.0 }
 0x494   :  { %v1198_v48 = vadd.f32 %v1197_v21, %v2174_v47 }
 0x496   :  { %v1199_v22 = vpack.c.bf16 %v1198_v48, %v1198_v48 }
 0x498   :  { %1596 = vmatmul.mubr.bf16.vlgmr.msra.gmra.mxu0 %v1199_v22 }
 0x558   :  { %v1305_v23 = vpop.f32.mrf.mxu0 }
 0x559   :  { %v1306_v27 = vadd.f32 %v1413_v26, %v1305_v23 }
 0x55a   :  { %v1597_v28 = vpop.f32.mrf.mxu0 }
 0x55b   :  { %1311 = vmax.xlane.f32.xlu0 %v1306_v27 }
 0x55c   :  { %v1308_v0 = vpop.f32.mrf.mxu0 }
 0x55e   :  { %v1598_v30 = vpop.f32.mrf.mxu0 }
 0x5e4   :  { %v1312_v31 = vpop.xlane.xlu0 %1311 }
 0x5e5   :  { %v1313_v32 = vsub.f32 %v1306_v27, %v1312_v31 }
 0x5e7   :  { %v1314_v34 = vmul.f32 1.442695, %v1313_v32 }
 0x5e9   :  { %1689 = vpow2.f32 %v1314_v34 }
 0x5f6   :  { %v1690_v35 = vpop.eup %1689 }
 0x5f7   :  { %1316 = vadd.xlane.f32.xlu0 %v1690_v35 }
 0x680   :  { %v1317_v36 = vpop.xlane.xlu0 %1316 }
 0x681   :  { %1691 = vrcp.f32 %v1317_v36 }
 0x68e   :  { %v1692_v37 = vpop.eup %1691 }
 0x68f   :  { %v1319_v38 = vmul.f32 %v1692_v37, %v1690_v35 }
 0x691   :  { %1320 = vst [vmem:[%s2226_s11] sm:$0xff] %v1319_v38 }
 0x692   :  { %1325 = vsyncpa [#allocation3], 1 }
 0x693   :  { %1326 = vsyncpa [#allocation5], 1 }
 0x694   :  { %1327 = vsyncpa [#allocation8], 1 }
 0x695   :  { %1328 = vsyncpa [#allocation11], 1 }
 0x696   :  { %1329 = vsyncpa [#allocation14], 1 }

</bundles_post_ra>
